<compile_context>
chip_gen: v7x
topology: tpu7x:2x2x1
jax: 0.10.0
libtpu: 0.0.40
codegen_flags: <defaults>
</compile_context>

<pallas_src>
import functools

import jax
import jax.numpy as jnp
from jax.experimental import pallas as pl
from jax.experimental.pallas import tpu as pltpu

_LANE = 128
_SUB = 8


def _round_up(x, m):
    return ((x + m - 1) // m) * m


def _softplus(x):
    # max(x,0) + log(1 + exp(-|x|)); log (not log1p) is fine: when exp(-|x|) is tiny
    # the term is added to |x|, so the absolute error is negligible.
    return jnp.maximum(x, 0.0) + jnp.log(1.0 + jnp.exp(-jnp.abs(x)))


def _logsigmoid(x):
    return jnp.minimum(x, 0.0) - jnp.log(1.0 + jnp.exp(-jnp.abs(x)))


def _pick_tile(rows, per_row_bytes, budget_bytes, cap):
    """Largest multiple-of-8 tile that fits the VMEM budget, split >=2 ways when possible."""
    t = max(per_row_bytes, budget_bytes) // per_row_bytes
    t = max(_SUB, min(cap, (t // _SUB) * _SUB))
    if rows > _SUB:
        # At least two roughly-equal blocks so both v7x TensorCores get work.
        t = min(t, _round_up(pl.cdiv(rows, 2), _SUB))
    return max(_SUB, min(t, _round_up(rows, _SUB)))


# --------------------------- L == 1 fast path (fully lane-dense) ---------------------------

def _bce_kernel_lane_dense(pos_ref, neg_ref, sel_ref, out_ref, *, inv_num_negs):
    pos = pos_ref[...].astype(jnp.float32)        # (TR, 128)        lane-dense
    neg = neg_ref[...].astype(jnp.float32)        # (TR, 128*NN)     lane-dense
    sp = _softplus(neg)                           # dense vregs -> no EUP amplification
    # Reduce each group of NN adjacent lanes onto the matching pos lane in a single
    # f32 MXU matmul (sel[c, j] = 1 iff c // NN == j); the MXU is otherwise idle here
    # and this avoids both a wrapper HBM transpose and an in-kernel relayout.
    neg_sum = jnp.dot(sp, sel_ref[...], preferred_element_type=jnp.float32)  # (TR, 128)
    out_ref[...] = (neg_sum * inv_num_negs - _logsigmoid(pos)).astype(out_ref.dtype)


def _bce_l1_lane_dense(pos_flat, neg2, out_dtype):
    """pos_flat: (M,), neg2: (M, NN) -> loss (M,). M = B*N, L == 1, NN <= 32."""
    (m,) = pos_flat.shape
    nn = neg2.shape[1]

    mp = _round_up(m, _LANE)
    if mp != m:
        # Single pad pass, only when B*N is not already a multiple of 128.  Garbage in
        # padded / ragged rows never leaks: every output lane only reduces over its own
        # NN negatives (the MXU matmul does not mix rows) and is sliced off below.
        pos_flat = jnp.pad(pos_flat, (0, mp - m))
        neg2 = jnp.pad(neg2, ((0, mp - m), (0, 0)))
    rows = mp // _LANE

    pos2 = pos_flat.reshape(rows, _LANE)          # zero-copy (contiguous) reshape
    negr = neg2.reshape(rows, _LANE * nn)         # zero-copy, fully lane-dense

    # 0/1 selection matrix (64*NN KiB): sel[c, j] = 1 iff c // nn == j.
    c = jnp.arange(_LANE * nn, dtype=jnp.int32)[:, None]
    j = jnp.arange(_LANE, dtype=jnp.int32)[None, :]
    sel = (c // nn == j).astype(jnp.float32)

    # VMEM accounting per (1, 128) row-group (f32 worst case):
    #   pos 2*512 B + neg 2*512*nn B + out 2*512 B (double-buffered blocks)
    #   + 512*nn B for the f32 softplus temporary feeding the MXU.
    per_row = 512 * (3 * nn + 4)
    sel_bytes = 2 * (_LANE * nn) * _LANE * 4
    budget = 14 * 1024 * 1024                     # fits v5e's 16 MiB default scoped VMEM
    tr = _pick_tile(rows, per_row, budget - sel_bytes, 2048)
    grid = pl.cdiv(rows, tr)

    bytes_accessed = (pos2.size * pos2.dtype.itemsize
                      + negr.size * negr.dtype.itemsize
                      + sel.size * 4
                      + rows * _LANE * jnp.dtype(out_dtype).itemsize)
    cost = pl.CostEstimate(
        flops=int(mp * nn * 2 * _LANE + mp * (4 * nn + 6)),
        transcendentals=int(2 * mp * (nn + 1)),
        bytes_accessed=int(bytes_accessed))

    out = pl.pallas_call(
        functools.partial(_bce_kernel_lane_dense, inv_num_negs=1.0 / nn),
        out_shape=jax.ShapeDtypeStruct((rows, _LANE), out_dtype),
        grid=(grid,),
        in_specs=[
            pl.BlockSpec((tr, _LANE), lambda i: (i, 0)),
            pl.BlockSpec((tr, _LANE * nn), lambda i: (i, 0)),
            # Constant block index -> DMA'd once per core, not re-fetched each step.
            pl.BlockSpec((_LANE * nn, _LANE), lambda i: (0, 0)),
        ],
        out_specs=pl.BlockSpec((tr, _LANE), lambda i: (i, 0)),
        compiler_params=pltpu.CompilerParams(
            dimension_semantics=("parallel",),
            vmem_limit_bytes=32 * 1024 * 1024),
        cost_estimate=cost,
    )(pos2, negr, sel)

    out = out.reshape(mp)
    return out[:m] if mp != m else out


# ------------------------ general path (any L; natural layout, no transposes) ------------------------

def _bce_kernel_rows(pos_ref, neg_ref, out_ref, *, inv_num_negs):
    pos = pos_ref[...].astype(jnp.float32)                                      # (TM, L)
    neg = neg_ref[...].astype(jnp.float32)                                      # (TM, NN)
    neg_mean = jnp.sum(_softplus(neg), axis=-1, keepdims=True) * inv_num_negs   # (TM, 1)
    out_ref[...] = (neg_mean - _logsigmoid(pos)).astype(out_ref.dtype)          # lane broadcast


def _bce_rows(pos2, neg2, out_dtype):
    """pos2: (M, L), neg2: (M, NN) -> loss (M, L); M on sublanes, L/NN on lanes."""
    m, l = pos2.shape
    nn = neg2.shape[1]

    lpad = _round_up(l, _LANE)
    npad = _round_up(nn, _LANE)
    # pos + out double-buffered, neg double-buffered, + f32 temporaries.
    per_row = 4 * (4 * lpad + 2 * npad + lpad + npad)
    tm = _pick_tile(m, per_row, 12 * 1024 * 1024, 4096)
    grid = pl.cdiv(m, tm)

    bytes_accessed = (pos2.size * pos2.dtype.itemsize
                      + neg2.size * neg2.dtype.itemsize
                      + m * l * jnp.dtype(out_dtype).itemsize)
    cost = pl.CostEstimate(
        flops=int(m * (5 * nn + 4 * l)),
        transcendentals=int(2 * m * (nn + l)),
        bytes_accessed=int(bytes_accessed))

    return pl.pallas_call(
        functools.partial(_bce_kernel_rows, inv_num_negs=1.0 / nn),
        out_shape=jax.ShapeDtypeStruct((m, l), out_dtype),
        grid=(grid,),
        in_specs=[
            pl.BlockSpec((tm, l), lambda i: (i, 0)),
            pl.BlockSpec((tm, nn), lambda i: (i, 0)),
        ],
        out_specs=pl.BlockSpec((tm, l), lambda i: (i, 0)),
        compiler_params=pltpu.CompilerParams(
            dimension_semantics=("parallel",),
            vmem_limit_bytes=32 * 1024 * 1024),
        cost_estimate=cost,
    )(pos2, neg2)


# ----------------------------------- public wrapper -----------------------------------

def bce_loss(pos_scores, neg_scores):
    """pos_scores: (B, N, L), neg_scores: (B, N, NUM_NEGS) -> loss (B, N*L)."""
    b, n, l = pos_scores.shape
    bn, nn_, num_negs = neg_scores.shape
    assert (b, n) == (bn, nn_), "batch / n dims must match"

    m = b * n
    out_dtype = pos_scores.dtype
    neg2 = neg_scores.reshape(m, num_negs)

    if l == 1 and num_negs <= 32:
        loss = _bce_l1_lane_dense(pos_scores.reshape(m), neg2, out_dtype)   # (M,)
        return loss.reshape(b, n)

    # TODO(synk): for 1 < L < 128 (or L == 1 with NUM_NEGS > 32) this natural-layout path
    # is correct but lane-sparse on the pos/out (and neg) side; a flattened lane-dense
    # variant would remove that amplification if such shapes become hot.
    loss2 = _bce_rows(pos_scores.reshape(m, l), neg2, out_dtype)            # (M, L)
    return loss2.reshape(b, n * l)


def _reference(pos_scores, neg_scores):
    b, n, l = pos_scores.shape
    pos = pos_scores.reshape(b, n * l)
    pos_part = jax.nn.log_sigmoid(pos)
    neg_part = jnp.mean(jax.nn.softplus(neg_scores), axis=-1)   # (b, n)
    return -pos_part + neg_part


if __name__ == "__main__":
    key = jax.random.PRNGKey(0)
    k1, k2, k3, k4, k5, k6 = jax.random.split(key, 6)

    # Case 1: primary shape family (L == 1) -> lane-dense fast path.
    B, N, L, NUM_NEGS = 2, 4, 1, 8
    pos1 = jax.random.normal(k1, (B, N, L), dtype=jnp.float32)
    neg1 = jax.random.normal(k2, (B, N, NUM_NEGS), dtype=jnp.float32)
    out1 = jax.block_until_ready(bce_loss(pos1, neg1))
    ref1 = _reference(pos1, neg1)
    assert out1.shape == (B, N * L)
    assert jnp.allclose(out1, ref1, atol=1e-5, rtol=1e-5)

    # Case 2: larger L == 1 case exercising multiple grid blocks + ragged padding.
    B2, N2, NN2 = 4, 1000, 8
    pos2 = jax.random.normal(k3, (B2, N2, 1), dtype=jnp.float32)
    neg2 = jax.random.normal(k4, (B2, N2, NN2), dtype=jnp.float32)
    out2 = jax.block_until_ready(bce_loss(pos2, neg2))
    ref2 = _reference(pos2, neg2)
    assert jnp.allclose(out2, ref2, atol=1e-5, rtol=1e-5)

    # Case 3: L > 1 with N == 1 (the other legal PyTorch broadcast) -> general path.
    B3, N3, L3, NN3 = 2, 1, 8, 8
    pos3 = jax.random.normal(k5, (B3, N3, L3), dtype=jnp.float32)
    neg3 = jax.random.normal(k6, (B3, N3, NN3), dtype=jnp.float32)
    out3 = jax.block_until_ready(bce_loss(pos3, neg3))
    ref3 = _reference(pos3, neg3)
    assert out3.shape == (B3, N3 * L3)
    assert jnp.allclose(out3, ref3, atol=1e-5, rtol=1e-5)

    print("KERNEL_OK")
</pallas_src>

<mosaic_0001>
module attributes {stable_mosaic.version = 11 : i64} {
  func.func @_bce_kernel_lane_dense(%arg0: i32, %arg1: memref<8x128xf32, #tpu.memory_space<vmem>>, %arg2: memref<8x1024xf32, #tpu.memory_space<vmem>>, %arg3: memref<1024x128xf32, #tpu.memory_space<vmem>>, %arg4: memref<8x128xf32, #tpu.memory_space<vmem>>) attributes {dimension_semantics = [#tpu.dimension_semantics<parallel>], iteration_bounds = array<i64: 1>, scalar_prefetch = 0 : i64, scratch_operands = 0 : i64, tpu.core_type = #tpu.core_type<tc>, window_params = [{transform_indices = @transform_0, window_bounds = array<i64: 8, 128>}, {transform_indices = @transform_1, window_bounds = array<i64: 8, 1024>}, {pipeline_mode = #tpu.pipeline_mode<synchronous>, transform_indices = @transform_2, window_bounds = array<i64: 1024, 128>}, {transform_indices = @transform_3, window_bounds = array<i64: 8, 128>}]} {
    %c0 = arith.constant 0 : index
    %c0_0 = arith.constant 0 : index
    %0 = vector.load %arg1[%c0, %c0_0] : memref<8x128xf32, #tpu.memory_space<vmem>>, vector<8x128xf32>
    %c0_1 = arith.constant 0 : index
    %c0_2 = arith.constant 0 : index
    %1 = vector.load %arg2[%c0_1, %c0_2] : memref<8x1024xf32, #tpu.memory_space<vmem>>, vector<8x1024xf32>
    %cst = arith.constant 0.000000e+00 : f32
    %2 = vector.broadcast %cst : f32 to vector<8x1024xf32>
    %3 = arith.maximumf %1, %2 : vector<8x1024xf32>
    %4 = math.absf %1 : vector<8x1024xf32>
    %cst_3 = arith.constant 0.000000e+00 : f32
    %5 = vector.broadcast %cst_3 : f32 to vector<8x1024xf32>
    %6 = arith.subf %5, %4 : vector<8x1024xf32>
    %7 = math.exp %6 : vector<8x1024xf32>
    %cst_4 = arith.constant 1.000000e+00 : f32
    %8 = vector.broadcast %cst_4 : f32 to vector<8x1024xf32>
    %9 = arith.addf %8, %7 : vector<8x1024xf32>
    %10 = math.log %9 : vector<8x1024xf32>
    %11 = arith.addf %3, %10 : vector<8x1024xf32>
    %c0_5 = arith.constant 0 : index
    %c0_6 = arith.constant 0 : index
    %12 = vector.load %arg3[%c0_5, %c0_6] : memref<1024x128xf32, #tpu.memory_space<vmem>>, vector<1024x128xf32>
    %cst_7 = arith.constant dense<0.000000e+00> : vector<8x128xf32>
    %13 = tpu.matmul %11, %12, %cst_7 {dimension_numbers = #tpu.dot_dimension_numbers<[1], [0], [0], [1], [0, 0, 1, 1], [], []>} : vector<8x1024xf32>, vector<1024x128xf32>, vector<8x128xf32> -> vector<8x128xf32>
    %cst_8 = arith.constant 1.250000e-01 : f32
    %14 = vector.broadcast %cst_8 : f32 to vector<8x128xf32>
    %15 = arith.mulf %13, %14 : vector<8x128xf32>
    %cst_9 = arith.constant 0.000000e+00 : f32
    %16 = vector.broadcast %cst_9 : f32 to vector<8x128xf32>
    %17 = arith.minimumf %0, %16 : vector<8x128xf32>
    %18 = math.absf %0 : vector<8x128xf32>
    %cst_10 = arith.constant 0.000000e+00 : f32
    %19 = vector.broadcast %cst_10 : f32 to vector<8x128xf32>
    %20 = arith.subf %19, %18 : vector<8x128xf32>
    %21 = math.exp %20 : vector<8x128xf32>
    %cst_11 = arith.constant 1.000000e+00 : f32
    %22 = vector.broadcast %cst_11 : f32 to vector<8x128xf32>
    %23 = arith.addf %22, %21 : vector<8x128xf32>
    %24 = math.log %23 : vector<8x128xf32>
    %25 = arith.subf %17, %24 : vector<8x128xf32>
    %26 = arith.subf %15, %25 : vector<8x128xf32>
    %c0_12 = arith.constant 0 : index
    %c0_13 = arith.constant 0 : index
    %27 = vector.load %arg4[%c0_12, %c0_13] : memref<8x128xf32, #tpu.memory_space<vmem>>, vector<8x128xf32>
    tpu.vector_store %arg4[%c0_12, %c0_13], %26 {strides = array<i32>} : memref<8x128xf32, #tpu.memory_space<vmem>>, vector<8x128xf32>,
    return
  }
  func.func @transform_0(%arg0: i32) -> (i32, i32) {
    %c0_i32 = arith.constant 0 : i32
    %c0_i32_0 = arith.constant 0 : i32
    return %arg0, %c0_i32 : i32, i32
  }
  func.func @transform_1(%arg0: i32) -> (i32, i32) {
    %c0_i32 = arith.constant 0 : i32
    %c0_i32_0 = arith.constant 0 : i32
    return %arg0, %c0_i32 : i32, i32
  }
  func.func @transform_2(%arg0: i32) -> (i32, i32) {
    %c0_i32 = arith.constant 0 : i32
    %c0_i32_0 = arith.constant 0 : i32
    %c0_i32_1 = arith.constant 0 : i32
    return %c0_i32, %c0_i32_0 : i32, i32
  }
  func.func @transform_3(%arg0: i32) -> (i32, i32) {
    %c0_i32 = arith.constant 0 : i32
    %c0_i32_0 = arith.constant 0 : i32
    return %arg0, %c0_i32 : i32, i32
  }
}

</mosaic_0001>

<bundles_post_ra>
// kernel: tpu_custom_call.1
= control target key start
LH: loop header
LB: loop body
LE: loop exit
PB: predicated region body
PF: predicated region fallthrough
CT: control target
= control target key end

     0   :  { %8 = vsyncpa [#allocation3], 0  ;;  %s1283_s0 = inlined_call_operand.hbm [shape: f32[1,128], index: 0, kind: input, shape index: {}]   ;;  %s1284_s1 = inlined_call_operand.hbm [shape: f32[1,1024], index: 1, kind: input, shape index: {}]   ;;  %s1285_s2 = inlined_call_operand.hbm [shape: f32[1024,128], index: 2, kind: input, shape index: {}]   ;;  %s1286_s3 = inlined_call_operand.hbm [shape: f32[1,128], index: 3, kind: output, shape index: {}]  }
   0x1   :  { %9 = vsyncpa [#allocation6], 0 }
   0x2   :  { %10 = vsyncpa [#allocation4], 0 }
   0x3   :  { %15 = vsyncadd [#allocation3], 112  ;;  %s1134_s12 = smov [#allocation2]   ;;  %s1040_s16 = scalar_lea.hbm %s1283_s0, 16 }
   0x4   :  { %s16_s13 = sshll.u32 %s1134_s12, 4  ;;  %p1041_p0 = scmp.ne.s32.totalorder %s1283_s0, %s1040_s16  ;;  %s17_s13 = int_to_ptr.vmem [resolvable:$true] %s16_s13 }
   0x5   :  { %p1044_p1 = scmp.lt.u32.totalorder %s1040_s16, %s1283_s0 }
   0x7   :  { %p1046_p2 = pnand %p1044_p1, %p1041_p0 }
   0x9   :  { %1049 = shalt.err (!%p1046_p2)
}
   0xa   :  { %s1050_s21 = scalar_lea.vmem %s17_s13, 16  ;;  %s1054_s22 = scalar_lea.vmem %s17_s13, 128 }
   0xb   :  { %p1051_p3 = scmp.ne.s32.totalorder %s17_s13, %s1050_s21  ;;  %p1055_p4 = scmp.lt.s32.totalorder %s17_s13, %s17_s13 }
   0xc   :  { %p1056_p5 = scmp.lt.s32.totalorder %s1054_s22, %s1050_s21 }
   0xe   :  { %p1057_p6 = por %p1056_p5, %p1055_p4 }
  0x10   :  { %p1058_p7 = pnand %p1057_p6, %p1051_p3 }
  0x12   :  { %1061 = shalt.err (!%p1058_p7)
}
  0x13   :  { %s1135_s23 = smov 16   ;;  %s1136_s24 = smov 1  }
  0x14   :  { %22 = dma.hbm_to_vmem [thread:$0]  %s1283_s0, 16, %s17_s13, [#allocation3], %s1135_s23, %s1135_s23, %s1136_s24  }
  0x15   :  { %27 = vsyncadd [#allocation6], 896  ;;  %s1137_s27 = smov [#allocation5]   ;;  %s1062_s4 = scalar_lea.hbm %s1284_s1, 128 }
  0x16   :  { %s28_s28 = sshll.u32 %s1137_s27, 4  ;;  %p1063_p8 = scmp.ne.s32.totalorder %s1284_s1, %s1062_s4  ;;  %s29_s28 = int_to_ptr.vmem [resolvable:$true] %s28_s28 }
  0x17   :  { %p1066_p9 = scmp.lt.u32.totalorder %s1062_s4, %s1284_s1 }
  0x19   :  { %p1068_p10 = pnand %p1066_p9, %p1063_p8 }
  0x1b   :  { %1071 = shalt.err (!%p1068_p10)
}
  0x1c   :  { %s1072_s9 = scalar_lea.vmem %s29_s28, 128  ;;  %s1076_s0 = scalar_lea.vmem %s29_s28, 1024 }
  0x1d   :  { %p1073_p11 = scmp.ne.s32.totalorder %s29_s28, %s1072_s9  ;;  %p1077_p12 = scmp.lt.s32.totalorder %s29_s28, %s29_s28 }
  0x1e   :  { %p1078_p13 = scmp.lt.s32.totalorder %s1076_s0, %s1072_s9 }
  0x20   :  { %p1079_p0 = por %p1078_p13, %p1077_p12 }
  0x22   :  { %p1080_p1 = pnand %p1079_p0, %p1073_p11 }
  0x24   :  { %1083 = shalt.err (!%p1080_p1)
}
  0x25   :  { %s1138_s10 = smov 128   ;;  %s1139_s11 = smov 8  }
  0x26   :  { %34 = dma.hbm_to_vmem [thread:$0]  %s1284_s1, 128, %s29_s28, [#allocation6], %s1138_s10, %s1138_s10, %s1139_s11  }
  0x27   :  { %s1140_s14 = smov [#allocation7]   ;;  %s1084_s18 = scalar_lea.hbm %s1285_s2, 16384 }
  0x28   :  { %s40_s15 = sshll.u32 %s1140_s14, 4  ;;  %p1085_p2 = scmp.ne.s32.totalorder %s1285_s2, %s1084_s18  ;;  %s41_s15 = int_to_ptr.vmem [resolvable:$true] %s40_s15 }
  0x29   :  { %p1088_p3 = scmp.lt.u32.totalorder %s1084_s18, %s1285_s2 }
  0x2b   :  { %p1090_p4 = pnand %p1088_p3, %p1085_p2 }
  0x2d   :  { %1093 = shalt.err (!%p1090_p4)
}
  0x2e   :  { %s1094_s25 = scalar_lea.vmem %s41_s15, 16384  ;;  %p1099_p6 = scmp.lt.s32.totalorder %s41_s15, %s41_s15 }
  0x2f   :  { %p1095_p5 = scmp.ne.s32.totalorder %s41_s15, %s1094_s25  ;;  %p1100_p7 = scmp.lt.s32.totalorder %s1094_s25, %s1094_s25 }
  0x31   :  { %p1101_p8 = por %p1100_p7, %p1099_p6 }
  0x33   :  { %p1102_p9 = pnand %p1101_p8, %p1095_p5 }
  0x35   :  { %1105 = shalt.err (!%p1102_p9)
}
  0x36   :  { %46 = dma.hbm_to_vmem [thread:$0]  %s1285_s2, 16384, %s41_s15, [#allocation6], %s1138_s10, %s1138_s10, %s1139_s11  }
  0x37   :  { %1128 = dma.done.wait [#allocation3], 128  }
  0x38   :  { %1129 = vsyncadd [#allocation3], 4294967168 }
  0x39   :  { %1130 = dma.done.wait [#allocation6], 17408  }
  0x3a   :  { %1131 = vsyncadd [#allocation6], 4294949888  ;;  %v153_v0 = vld [vmem:[#allocation7 + $0x80] sm:$0xff]  ;;  %v154_v1 = vld [vmem:[#allocation7 + $0x88] sm:$0xff] }
  0x3b   :  { %v137_v2 = vld [vmem:[#allocation7] sm:$0xff]  ;;  %v867_v3 = vpack.c.bf16 %v154_v1, %v153_v0  ;;  %v138_v4 = vld [vmem:[#allocation7 + $0x8] sm:$0xff]  ;;  %v155_v11 = vld [vmem:[#allocation7 + $0x90] sm:$0xff] }
  0x3c   :  { %v185_v5 = vld [vmem:[#allocation7 + $0x180] sm:$0xff]  ;;  %v186_v6 = vld [vmem:[#allocation7 + $0x188] sm:$0xff]  ;;  %v869_v7 = vpack.c.bf16 %v138_v4, %v137_v2  ;;  %v156_v13 = vld [vmem:[#allocation7 + $0x98] sm:$0xff] }
  0x3d   :  { %v899_v8 = vpack.c.bf16 %v186_v6, %v185_v5  ;;  %v169_v9 = vld [vmem:[#allocation7 + $0x100] sm:$0xff]  ;;  %v170_v10 = vld [vmem:[#allocation7 + $0x108] sm:$0xff]  ;;  %868 = vmatprep.subr.bf16.mxu0 %v867_v3  ;;  %v139_v14 = vld [vmem:[#allocation7 + $0x10] sm:$0xff]  ;;  %v871_v16 = vpack.c.bf16 %v156_v13, %v155_v11 }
  0x3e   :  { %v901_v12 = vpack.c.bf16 %v170_v10, %v169_v9  ;;  %v140_v15 = vld [vmem:[#allocation7 + $0x18] sm:$0xff]  ;;  %870 = vmatpush3.bf16.msra.mxu0 %v869_v7  ;;  %v187_v18 = vld [vmem:[#allocation7 + $0x190] sm:$0xff]  ;;  %v157_v23 = vld [vmem:[#allocation7 + $0xa0] sm:$0xff] }
  0x3f   :  { %900 = vmatprep.subr.bf16.mxu1 %v899_v8  ;;  %v873_v17 = vpack.c.bf16 %v140_v15, %v139_v14  ;;  %v188_v19 = vld [vmem:[#allocation7 + $0x198] sm:$0xff]  ;;  %v171_v20 = vld [vmem:[#allocation7 + $0x110] sm:$0xff]  ;;  %v158_v24 = vld [vmem:[#allocation7 + $0xa8] sm:$0xff]  ;;  %872 = vmatprep.subr.bf16.mxu0 %v871_v16 }
  0x40   :  { %902 = vmatpush3.bf16.msra.mxu1 %v901_v12  ;;  %v903_v21 = vpack.c.bf16 %v188_v19, %v187_v18  ;;  %v172_v22 = vld [vmem:[#allocation7 + $0x118] sm:$0xff]  ;;  %v875_v26 = vpack.c.bf16 %v158_v24, %v157_v23  ;;  %v141_v27 = vld [vmem:[#allocation7 + $0x20] sm:$0xff]  ;;  %v142_v28 = vld [vmem:[#allocation7 + $0x28] sm:$0xff] }
  0x41   :  { %v905_v25 = vpack.c.bf16 %v172_v22, %v171_v20  ;;  %v189_v29 = vld [vmem:[#allocation7 + $0x1a0] sm:$0xff]  ;;  %v190_v30 = vld [vmem:[#allocation7 + $0x1a8] sm:$0xff]  ;;  %v877_v33 = vpack.c.bf16 %v142_v28, %v141_v27  ;;  %v159_v35 = vld [vmem:[#allocation7 + $0xb0] sm:$0xff] }
  0x42   :  { %904 = vmatprep.subr.bf16.mxu1 %v903_v21  ;;  %v173_v31 = vld [vmem:[#allocation7 + $0x120] sm:$0xff]  ;;  %v174_v32 = vld [vmem:[#allocation7 + $0x128] sm:$0xff]  ;;  %874 = vmatpush3.bf16.msra.mxu0 %v873_v17  ;;  %v907_v34 = vpack.c.bf16 %v190_v30, %v189_v29  ;;  %v160_v36 = vld [vmem:[#allocation7 + $0xb8] sm:$0xff] }
  0x43   :  { %v143_v37 = vld [vmem:[#allocation7 + $0x30] sm:$0xff]  ;;  %876 = vmatprep.subr.bf16.mxu0 %v875_v26  ;;  %v909_v38 = vpack.c.bf16 %v174_v32, %v173_v31  ;;  %v879_v39 = vpack.c.bf16 %v160_v36, %v159_v35  ;;  %v144_v40 = vld [vmem:[#allocation7 + $0x38] sm:$0xff]  ;;  %v161_v46 = vld [vmem:[#allocation7 + $0xc0] sm:$0xff] }
  0x44   :  { %906 = vmatpush3.bf16.msra.mxu1 %v905_v25  ;;  %v191_v41 = vld [vmem:[#allocation7 + $0x1b0] sm:$0xff]  ;;  %v192_v42 = vld [vmem:[#allocation7 + $0x1b8] sm:$0xff]  ;;  %v162_v47 = vld [vmem:[#allocation7 + $0xc8] sm:$0xff]  ;;  %v881_v48 = vpack.c.bf16 %v144_v40, %v143_v37 }
  0x45   :  { %908 = vmatprep.subr.bf16.mxu1 %v907_v34  ;;  %v911_v43 = vpack.c.bf16 %v192_v42, %v191_v41  ;;  %v175_v44 = vld [vmem:[#allocation7 + $0x130] sm:$0xff]  ;;  %v176_v45 = vld [vmem:[#allocation7 + $0x138] sm:$0xff]  ;;  %v193_v49 = vld [vmem:[#allocation7 + $0x1c0] sm:$0xff]  ;;  %v883_v52 = vpack.c.bf16 %v162_v47, %v161_v46 }
  0x46   :  { %878 = vmatpush3.bf16.msra.mxu0 %v877_v33  ;;  %v194_v50 = vld [vmem:[#allocation7 + $0x1c8] sm:$0xff]  ;;  %v913_v51 = vpack.c.bf16 %v176_v45, %v175_v44  ;;  %v145_v53 = vld [vmem:[#allocation7 + $0x40] sm:$0xff]  ;;  %v163_v58 = vld [vmem:[#allocation7 + $0xd0] sm:$0xff] }
  0x47   :  { %880 = vmatprep.subr.bf16.mxu0 %v879_v39  ;;  %v146_v54 = vld [vmem:[#allocation7 + $0x48] sm:$0xff]  ;;  %v177_v55 = vld [vmem:[#allocation7 + $0x140] sm:$0xff]  ;;  %v915_v56 = vpack.c.bf16 %v194_v50, %v193_v49  ;;  %v164_v59 = vld [vmem:[#allocation7 + $0xd8] sm:$0xff] }
  0x48   :  { %910 = vmatpush3.bf16.msra.mxu1 %v909_v38  ;;  %v178_v57 = vld [vmem:[#allocation7 + $0x148] sm:$0xff]  ;;  %v195_v60 = vld [vmem:[#allocation7 + $0x1d0] sm:$0xff]  ;;  %v196_v61 = vld [vmem:[#allocation7 + $0x1d8] sm:$0xff]  ;;  %v885_v62 = vpack.c.bf16 %v146_v54, %v145_v53  ;;  %v887_v2 = vpack.c.bf16 %v164_v59, %v163_v58 }
  0x49   :  { %912 = vmatprep.subr.bf16.mxu1 %v911_v43  ;;  %v147_v63 = vld [vmem:[#allocation7 + $0x50] sm:$0xff]  ;;  %v148_v0 = vld [vmem:[#allocation7 + $0x58] sm:$0xff]  ;;  %v917_v1 = vpack.c.bf16 %v178_v57, %v177_v55  ;;  %v165_v5 = vld [vmem:[#allocation7 + $0xe0] sm:$0xff]  ;;  %v919_v6 = vpack.c.bf16 %v196_v61, %v195_v60 }
  0x4a   :  { %882 = vmatpush3.bf16.msra.mxu0 %v881_v48  ;;  %v179_v3 = vld [vmem:[#allocation7 + $0x150] sm:$0xff]  ;;  %v180_v4 = vld [vmem:[#allocation7 + $0x158] sm:$0xff]  ;;  %v166_v7 = vld [vmem:[#allocation7 + $0xe8] sm:$0xff]  ;;  %v889_v15 = vpack.c.bf16 %v148_v0, %v147_v63 }
  0x4b   :  { %884 = vmatprep.subr.bf16.mxu0 %v883_v52  ;;  %v197_v8 = vld [vmem:[#allocation7 + $0x1e0] sm:$0xff]  ;;  %v198_v9 = vld [vmem:[#allocation7 + $0x1e8] sm:$0xff]  ;;  %v167_v14 = vld [vmem:[#allocation7 + $0xf0] sm:$0xff]  ;;  %v921_v19 = vpack.c.bf16 %v180_v4, %v179_v3  ;;  %v891_v20 = vpack.c.bf16 %v166_v7, %v165_v5 }
  0x4c   :  { %914 = vmatpush3.bf16.msra.mxu1 %v913_v51  ;;  %v149_v10 = vld [vmem:[#allocation7 + $0x60] sm:$0xff]  ;;  %v150_v11 = vld [vmem:[#allocation7 + $0x68] sm:$0xff]  ;;  %v168_v16 = vld [vmem:[#allocation7 + $0xf8] sm:$0xff]  ;;  %v923_v24 = vpack.c.bf16 %v198_v9, %v197_v8 }
  0x4d   :  { %916 = vmatprep.subr.bf16.mxu1 %v915_v56  ;;  %v181_v12 = vld [vmem:[#allocation7 + $0x160] sm:$0xff]  ;;  %v182_v13 = vld [vmem:[#allocation7 + $0x168] sm:$0xff]  ;;  %v151_v17 = vld [vmem:[#allocation7 + $0x70] sm:$0xff]  ;;  %v893_v32 = vpack.c.bf16 %v150_v11, %v149_v10  ;;  %v895_v34 = vpack.c.bf16 %v168_v16, %v167_v14 }
  0x4e   :  { %886 = vmatpush3.bf16.msra.mxu0 %v885_v62  ;;  %v152_v18 = vld [vmem:[#allocation7 + $0x78] sm:$0xff]  ;;  %v199_v21 = vld [vmem:[#allocation7 + $0x1f0] sm:$0xff]  ;;  %v1202_v23 = vld [vmem:[#allocation5] sm:$0xff]  ;;  %v925_v33 = vpack.c.bf16 %v182_v13, %v181_v12 }
  0x4f   :  { %888 = vmatprep.subr.bf16.mxu0 %v887_v2  ;;  %v200_v22 = vld [vmem:[#allocation7 + $0x1f8] sm:$0xff]  ;;  %v1204_v25 = vld [vmem:[#allocation5 + $0x8] sm:$0xff]  ;;  %v1206_v26 = vld [vmem:[#allocation5 + $0x10] sm:$0xff]  ;;  %v73_v37 = vand.u32 2147483647, %v1202_v23  ;;  %v897_v39 = vpack.c.bf16 %v152_v18, %v151_v17 }
  0x50   :  { %918 = vmatpush3.bf16.msra.mxu1 %v917_v1  ;;  %v1208_v27 = vld [vmem:[#allocation5 + $0x18] sm:$0xff]  ;;  %v183_v28 = vld [vmem:[#allocation7 + $0x170] sm:$0xff]  ;;  %v1210_v29 = vld [vmem:[#allocation5 + $0x20] sm:$0xff]  ;;  %v74_v40 = vand.u32 2147483647, %v1204_v25  ;;  %v927_v43 = vpack.c.bf16 %v200_v22, %v199_v21 }
  0x51   :  { %920 = vmatprep.subr.bf16.mxu1 %v919_v6  ;;  %v1212_v30 = vld [vmem:[#allocation5 + $0x28] sm:$0xff]  ;;  %v1214_v31 = vld [vmem:[#allocation5 + $0x30] sm:$0xff]  ;;  %v184_v35 = vld [vmem:[#allocation7 + $0x178] sm:$0xff]  ;;  %v75_v41 = vand.u32 2147483647, %v1206_v26  ;;  %v81_v48 = vsub.f32 0.0, %v73_v37 }
  0x52   :  { %890 = vmatpush3.bf16.msra.mxu0 %v889_v15  ;;  %v1216_v36 = vld [vmem:[#allocation5 + $0x38] sm:$0xff]  ;;  %v217_v38 = vld [vmem:[#allocation7 + $0x280] sm:$0xff]  ;;  %v76_v42 = vand.u32 2147483647, %v1208_v27  ;;  %v77_v44 = vand.u32 2147483647, %v1210_v29  ;;  %v929_v52 = vpack.c.bf16 %v184_v35, %v183_v28  ;;  %v284_v28 = vlaneseq }
  0x53   :  { %892 = vmatprep.subr.bf16.mxu0 %v891_v20  ;;  %v78_v45 = vand.u32 2147483647, %v1212_v30  ;;  %v79_v46 = vand.u32 2147483647, %v1214_v31  ;;  %v80_v47 = vand.u32 2147483647, %v1216_v36 }
  0x54   :  { %922 = vmatpush3.bf16.msra.mxu1 %v921_v19  ;;  %v82_v49 = vsub.f32 0.0, %v74_v40  ;;  %v83_v50 = vsub.f32 0.0, %v75_v41  ;;  %v218_v51 = vld [vmem:[#allocation7 + $0x288] sm:$0xff]  ;;  %v84_v53 = vsub.f32 0.0, %v76_v42  ;;  %v85_v54 = vsub.f32 0.0, %v77_v44  ;;  %v249_v63 = vld [vmem:[#allocation7 + $0x380] sm:$0xff] }
  0x55   :  { %924 = vmatprep.subr.bf16.mxu1 %v923_v24  ;;  %v86_v55 = vsub.f32 0.0, %v78_v45  ;;  %v87_v56 = vsub.f32 0.0, %v79_v46  ;;  %v89_v57 = vmul.f32 1.442695, %v81_v48  ;;  %v931_v59 = vpack.c.bf16 %v218_v51, %v217_v38  ;;  %v250_v2 = vld [vmem:[#allocation7 + $0x388] sm:$0xff] }
  0x56   :  { %894 = vmatpush3.bf16.msra.mxu0 %v893_v32  ;;  %v91_v58 = vmul.f32 1.442695, %v82_v49  ;;  %v88_v60 = vsub.f32 0.0, %v80_v47  ;;  %v93_v61 = vmul.f32 1.442695, %v83_v50  ;;  %v963_v4 = vpack.c.bf16 %v250_v2, %v249_v63 }
  0x57   :  { %896 = vmatprep.subr.bf16.mxu0 %v895_v34  ;;  %v95_v62 = vmul.f32 1.442695, %v84_v53  ;;  %1004 = vpow2.f32 %v89_v57  ;;  %v97_v0 = vmul.f32 1.442695, %v85_v54  ;;  %v99_v1 = vmul.f32 1.442695, %v86_v55 }
  0x58   :  { %926 = vmatpush3.bf16.msra.mxu1 %v925_v33  ;;  %1006 = vpow2.f32 %v91_v58  ;;  %v101_v3 = vmul.f32 1.442695, %v87_v56  ;;  %v103_v5 = vmul.f32 1.442695, %v88_v60  ;;  %v1141_v22 = vmov 1966171168  }
  0x59   :  { %928 = vmatprep.subr.bf16.mxu1 %v927_v43  ;;  %1008 = vpow2.f32 %v93_v61  ;;  %v282_v24 = vunpack.c.l.s4 %v1141_v22  ;;  %v65_v32 = vmax.f32 %v1202_v23, 0.0  ;;  %v66_v34 = vmax.f32 %v1204_v25, 0.0  ;;  %v234_v22 = vld [vmem:[#allocation7 + $0x308] sm:$0xff] }
  0x5a   :  { %898 = vmatpush3.bf16.msra.mxu0 %v897_v39  ;;  %1010 = vpow2.f32 %v95_v62  ;;  %v285_v37 = vshrl.u32 %v284_v28, 7  ;;  %v67_v39 = vmax.f32 %v1206_v26, 0.0  ;;  %v68_v42 = vmax.f32 %v1208_v27, 0.0 }
  0x5b   :  { %932 = vmatprep.subr.bf16.mxu0 %v931_v59  ;;  %1012 = vpow2.f32 %v97_v0  ;;  %v283_v35 = vunpack.c.0.s8 %v282_v24  ;;  %v69_v45 = vmax.f32 %v1210_v29, 0.0  ;;  %v70_v23 = vmax.f32 %v1212_v30, 0.0  ;;  %v219_v24 = vld [vmem:[#allocation7 + $0x290] sm:$0xff] }
  0x5c   :  { %930 = vmatpush3.bf16.msra.mxu1 %v929_v52  ;;  %1014 = vpow2.f32 %v99_v1  ;;  %v71_v26 = vmax.f32 %v1214_v31, 0.0  ;;  %v72_v52 = vmax.f32 %v1216_v36, 0.0 }
  0x5d   :  { %964 = vmatprep.subr.bf16.mxu1 %v963_v4  ;;  %1016 = vpow2.f32 %v101_v3  ;;  %v1232_v50 = vsub.s32 %v283_v35, %v285_v37  ;;  %v251_v35 = vld [vmem:[#allocation7 + $0x390] sm:$0xff]  ;;  %v252_v37 = vld [vmem:[#allocation7 + $0x398] sm:$0xff] }
  0x5e   :  { %1018 = vpow2.f32 %v103_v5 }
  0x61   :  { %v1005_v6 = vpop.eup %1004 }
  0x62   :  { %v1007_v7 = vpop.eup %1006  ;;  %v105_v8 = vadd.f32 1.0, %v1005_v6 }
  0x63   :  { %v1009_v9 = vpop.eup %1008  ;;  %v106_v10 = vadd.f32 1.0, %v1007_v7 }
  0x64   :  { %v1011_v11 = vpop.eup %1010  ;;  %v107_v12 = vadd.f32 1.0, %v1009_v9  ;;  %1020 = vlog2.f32 %v105_v8 }
  0x65   :  { %v1013_v13 = vpop.eup %1012  ;;  %v108_v14 = vadd.f32 1.0, %v1011_v11  ;;  %1022 = vlog2.f32 %v106_v10 }
  0x66   :  { %v1015_v15 = vpop.eup %1014  ;;  %v109_v16 = vadd.f32 1.0, %v1013_v13  ;;  %1024 = vlog2.f32 %v107_v12 }
  0x67   :  { %v1017_v17 = vpop.eup %1016  ;;  %v110_v18 = vadd.f32 1.0, %v1015_v15  ;;  %1026 = vlog2.f32 %v108_v14  ;;  %v201_v14 = vld [vmem:[#allocation7 + $0x200] sm:$0xff] }
  0x68   :  { %v1019_v19 = vpop.eup %1018  ;;  %v111_v20 = vadd.f32 1.0, %v1017_v17  ;;  %1028 = vlog2.f32 %v109_v16 }
  0x69   :  { %v112_v21 = vadd.f32 1.0, %v1019_v19  ;;  %1030 = vlog2.f32 %v110_v18 }
  0x6a   :  { %1032 = vlog2.f32 %v111_v20  ;;  %v202_v20 = vld [vmem:[#allocation7 + $0x208] sm:$0xff] }
  0x6b   :  { %1034 = vlog2.f32 %v112_v21  ;;  %v233_v21 = vld [vmem:[#allocation7 + $0x300] sm:$0xff] }
  0x6e   :  { %v1021_v33 = vpop.eup %1020 }
  0x6f   :  { %v1023_v38 = vpop.eup %1022  ;;  %v114_v40 = vmul.f32 0.6931472, %v1021_v33 }
  0x70   :  { %v1025_v41 = vpop.eup %1024  ;;  %v116_v43 = vmul.f32 0.6931472, %v1023_v38 }
  0x71   :  { %v1027_v44 = vpop.eup %1026  ;;  %v118_v46 = vmul.f32 0.6931472, %v1025_v41  ;;  %v129_v47 = vadd.f32 %v114_v40, %v65_v32  ;;  %v965_v40 = vpack.c.bf16 %v234_v22, %v233_v21  ;;  %v241_v21 = vld [vmem:[#allocation7 + $0x340] sm:$0xff]  ;;  %v242_v22 = vld [vmem:[#allocation7 + $0x348] sm:$0xff] }
  0x72   :  { %v1029_v48 = vpop.eup %1028  ;;  %v120_v49 = vmul.f32 0.6931472, %v1027_v44  ;;  %v130_v25 = vadd.f32 %v116_v43, %v66_v34  ;;  %v220_v34 = vld [vmem:[#allocation7 + $0x298] sm:$0xff] }
  0x73   :  { %v1031_v51 = vpop.eup %1030  ;;  %v122_v53 = vmul.f32 0.6931472, %v1029_v48  ;;  %v131_v27 = vadd.f32 %v118_v46, %v67_v39  ;;  %v933_v39 = vpack.c.bf16 %v202_v20, %v201_v14  ;;  %v203_v46 = vld [vmem:[#allocation7 + $0x210] sm:$0xff]  ;;  %v935_v48 = vpack.c.bf16 %v220_v34, %v219_v24 }
  0x74   :  { %v1033_v54 = vpop.eup %1032  ;;  %v124_v55 = vmul.f32 0.6931472, %v1031_v51  ;;  %v132_v56 = vadd.f32 %v120_v49, %v68_v42  ;;  %v273_v29 = vcombine.low %v129_v47, %v130_v25  ;;  %v274_v57 = vcombine.high %v129_v47, %v130_v25  ;;  %v204_v47 = vld [vmem:[#allocation7 + $0x218] sm:$0xff]  ;;  %v235_v49 = vld [vmem:[#allocation7 + $0x310] sm:$0xff]  ;;  %v221_v51 = vld [vmem:[#allocation7 + $0x2a0] sm:$0xff] }
  0x75   :  { %v1035_v58 = vpop.eup %1034  ;;  %v126_v59 = vmul.f32 0.6931472, %v1033_v54  ;;  %v133_v60 = vadd.f32 %v122_v53, %v69_v45  ;;  %v236_v25 = vld [vmem:[#allocation7 + $0x318] sm:$0xff]  ;;  %v254_v53 = vld [vmem:[#allocation7 + $0x3a8] sm:$0xff]  ;;  %v227_v24 = vld [vmem:[#allocation7 + $0x2d0] sm:$0xff] }
  0x76   :  { %v128_v30 = vmul.f32 0.6931472, %v1035_v58  ;;  %v134_v61 = vadd.f32 %v124_v55, %v70_v23  ;;  %v275_v62 = vcombine.low %v131_v27, %v132_v56  ;;  %v287_v63 = vrot.slane %v273_v29, %v1232_v50  ;;  %v205_v29 = vld [vmem:[#allocation7 + $0x220] sm:$0xff] }
  0x77   :  { %v135_v0 = vadd.f32 %v126_v59, %v71_v26  ;;  %v276_v1 = vcombine.high %v131_v27, %v132_v56  ;;  %v1238_v31 = vrot.slane %v274_v57, %v1232_v50  ;;  %v967_v23 = vpack.c.bf16 %v252_v37, %v251_v35  ;;  %v222_v26 = vld [vmem:[#allocation7 + $0x2a8] sm:$0xff]  ;;  %v211_v37 = vld [vmem:[#allocation7 + $0x250] sm:$0xff] }
  0x78   :  { %v136_v36 = vadd.f32 %v128_v30, %v72_v52  ;;  %v277_v2 = vcombine.low %v133_v60, %v134_v61  ;;  %v301_v3 = vrot.slane %v275_v62, %v1232_v50  ;;  %v278_v4 = vcombine.high %v133_v60, %v134_v61  ;;  %v253_v52 = vld [vmem:[#allocation7 + $0x3a0] sm:$0xff]  ;;  %v206_v57 = vld [vmem:[#allocation7 + $0x228] sm:$0xff]  ;;  %v223_v61 = vld [vmem:[#allocation7 + $0x2b0] sm:$0xff] }
  0x79   :  { %v1242_v5 = vrot.slane %v276_v1, %v1232_v50  ;;  %v937_v55 = vpack.c.bf16 %v204_v47, %v203_v46  ;;  %v969_v56 = vpack.c.bf16 %v236_v25, %v235_v49  ;;  %v939_v58 = vpack.c.bf16 %v222_v26, %v221_v51  ;;  %v237_v60 = vld [vmem:[#allocation7 + $0x320] sm:$0xff]  ;;  %v238_v30 = vld [vmem:[#allocation7 + $0x328] sm:$0xff]  ;;  %v224_v62 = vld [vmem:[#allocation7 + $0x2b8] sm:$0xff] }
  0x7a   :  { %v279_v6 = vcombine.low %v135_v0, %v136_v36  ;;  %v315_v7 = vrot.slane %v277_v2, %v1232_v50  ;;  %v338_v8 = vcombine.high %v287_v63, %v301_v3  ;;  %v337_v9 = vcombine.low %v287_v63, %v301_v3  ;;  %v255_v63 = vld [vmem:[#allocation7 + $0x3b0] sm:$0xff]  ;;  %v208_v3 = vld [vmem:[#allocation7 + $0x238] sm:$0xff]  ;;  %v262_v46 = vld [vmem:[#allocation7 + $0x3e8] sm:$0xff] }
  0x7b   :  { %v280_v10 = vcombine.high %v135_v0, %v136_v36  ;;  %v1246_v11 = vrot.slane %v278_v4, %v1232_v50  ;;  %v340_v13 = vcombine.high %v1238_v31, %v1242_v5  ;;  %v971_v59 = vpack.c.bf16 %v254_v53, %v253_v52  ;;  %v256_v0 = vld [vmem:[#allocation7 + $0x3b8] sm:$0xff]  ;;  %v207_v2 = vld [vmem:[#allocation7 + $0x230] sm:$0xff]  ;;  %v214_v49 = vld [vmem:[#allocation7 + $0x268] sm:$0xff] }
  0x7c   :  { %v329_v12 = vrot.slane %v279_v6, %v1232_v50  ;;  %v365_v17 = vrot.slane %v338_v8, %v1232_v50  ;;  %v351_v19 = vrot.slane %v337_v9, %v1232_v50  ;;  %v941_v1 = vpack.c.bf16 %v206_v57, %v205_v29  ;;  %v240_v8 = vld [vmem:[#allocation7 + $0x338] sm:$0xff]  ;;  %v225_v9 = vld [vmem:[#allocation7 + $0x2c0] sm:$0xff]  ;;  %v246_v52 = vld [vmem:[#allocation7 + $0x368] sm:$0xff] }
  0x7d   :  { %v1252_v15 = vrot.slane %v280_v10, %v1232_v50  ;;  %v372_v38 = vrot.slane %v340_v13, %v1232_v50  ;;  %v973_v36 = vpack.c.bf16 %v238_v30, %v237_v60  ;;  %v943_v4 = vpack.c.bf16 %v224_v62, %v223_v61  ;;  %v226_v10 = vld [vmem:[#allocation7 + $0x2c8] sm:$0xff]  ;;  %v245_v26 = vld [vmem:[#allocation7 + $0x360] sm:$0xff]  ;;  %v231_v53 = vld [vmem:[#allocation7 + $0x2f0] sm:$0xff] }
  0x7e   :  { %v342_v16 = vcombine.high %v315_v7, %v329_v12  ;;  %v341_v18 = vcombine.low %v315_v7, %v329_v12  ;;  %v975_v6 = vpack.c.bf16 %v256_v0, %v255_v63  ;;  %v239_v7 = vld [vmem:[#allocation7 + $0x330] sm:$0xff]  ;;  %v257_v12 = vld [vmem:[#allocation7 + $0x3c0] sm:$0xff]  ;;  %v258_v13 = vld [vmem:[#allocation7 + $0x3c8] sm:$0xff]  ;;  %v945_v14 = vpack.c.bf16 %v208_v3, %v207_v2 }
  0x7f   :  { %v344_v28 = vcombine.high %v1246_v11, %v1252_v15  ;;  %v979_v20 = vpack.c.bf16 %v258_v13, %v257_v12  ;;  %v981_v35 = vpack.c.bf16 %v242_v22, %v241_v21  ;;  %v343_v29 = vcombine.low %v1246_v11, %v1252_v15  ;;  %v216_v30 = vld [vmem:[#allocation7 + $0x278] sm:$0xff]  ;;  %v247_v62 = vld [vmem:[#allocation7 + $0x370] sm:$0xff] }
  0x80   :  { %v393_v32 = vrot.slane %v342_v16, %v1232_v50  ;;  %v379_v33 = vrot.slane %v341_v18, %v1232_v50  ;;  %v977_v16 = vpack.c.bf16 %v240_v8, %v239_v7  ;;  %v210_v18 = vld [vmem:[#allocation7 + $0x248] sm:$0xff]  ;;  %v248_v63 = vld [vmem:[#allocation7 + $0x378] sm:$0xff] }
  0x81   :  { %v400_v41 = vrot.slane %v344_v28, %v1232_v50  ;;  %v228_v28 = vld [vmem:[#allocation7 + $0x2d8] sm:$0xff] }
  0x82   :  { %v405_v42 = vcombine.low %v365_v17, %v393_v32  ;;  %v406_v43 = vcombine.high %v365_v17, %v393_v32  ;;  %v401_v44 = vcombine.low %v351_v19, %v379_v33  ;;  %v402_v45 = vcombine.high %v351_v19, %v379_v33  ;;  %v209_v17 = vld [vmem:[#allocation7 + $0x240] sm:$0xff]  ;;  %v259_v32 = vld [vmem:[#allocation7 + $0x3d0] sm:$0xff]  ;;  %v260_v33 = vld [vmem:[#allocation7 + $0x3d8] sm:$0xff] }
  0x83   :  { %v407_v27 = vcombine.low %v372_v38, %v400_v41  ;;  %v408_v54 = vcombine.high %v372_v38, %v400_v41  ;;  %v947_v19 = vpack.c.bf16 %v226_v10, %v225_v9  ;;  %v949_v34 = vpack.c.bf16 %v210_v18, %v209_v17  ;;  %v212_v38 = vld [vmem:[#allocation7 + $0x258] sm:$0xff]  ;;  %v243_v41 = vld [vmem:[#allocation7 + $0x350] sm:$0xff] }
  0x84   :  { %481 = vmatprep.mubr.f32.mxu0 %v405_v42  ;;  %551 = vmatprep.mubr.f32.mxu1 %v406_v43  ;;  %v244_v42 = vld [vmem:[#allocation7 + $0x358] sm:$0xff]  ;;  %v229_v43 = vld [vmem:[#allocation7 + $0x2e0] sm:$0xff]  ;;  %v953_v47 = vpack.c.bf16 %v212_v38, %v211_v37 }
  0x85   :  { %482 = vmatmul.mubr.f32.vlgmr.msra.gmra.mrb[0].mxu0 %v401_v44  ;;  %552 = vmatmul.mubr.f32.vlgmr.msra.gmra.mrb[0].mxu1 %v402_v45  ;;  %v230_v44 = vld [vmem:[#allocation7 + $0x2e8] sm:$0xff]  ;;  %v261_v45 = vld [vmem:[#allocation7 + $0x3e0] sm:$0xff] }
  0x86   :  { %934 = vmatpush3.bf16.msra.mxu0 %v933_v39  ;;  %966 = vmatpush3.bf16.msra.mxu1 %v965_v40  ;;  %v951_v39 = vpack.c.bf16 %v228_v28, %v227_v24  ;;  %v983_v40 = vpack.c.bf16 %v260_v33, %v259_v32  ;;  %v955_v25 = vpack.c.bf16 %v230_v44, %v229_v43 }
  0x87   :  { %936 = vmatprep.subr.bf16.mxu0 %v935_v48  ;;  %968 = vmatprep.subr.bf16.mxu1 %v967_v23  ;;  %v985_v48 = vpack.c.bf16 %v244_v42, %v243_v41  ;;  %v213_v23 = vld [vmem:[#allocation7 + $0x260] sm:$0xff]  ;;  %v987_v51 = vpack.c.bf16 %v262_v46, %v261_v45 }
  0x88   :  { %621 = vmatprep.mubr.f32.mxu0 %v407_v27  ;;  %691 = vmatprep.mubr.f32.mxu1 %v408_v54  ;;  %v232_v27 = vld [vmem:[#allocation7 + $0x2f8] sm:$0xff]  ;;  %v263_v54 = vld [vmem:[#allocation7 + $0x3f0] sm:$0xff]  ;;  %v957_v57 = vpack.c.bf16 %v214_v49, %v213_v23 }
  0x89   :  { %v959_v60 = vpack.c.bf16 %v232_v27, %v231_v53 }
  0x8a   :  { %938 = vmatpush3.bf16.msra.mxu0 %v937_v55  ;;  %970 = vmatpush3.bf16.msra.mxu1 %v969_v56  ;;  %v264_v55 = vld [vmem:[#allocation7 + $0x3f8] sm:$0xff]  ;;  %v339_v56 = vcombine.low %v1238_v31, %v1242_v5  ;;  %v993_v5 = vpack.c.bf16 %v248_v63, %v247_v62 }
  0x8b   :  { %940 = vmatprep.subr.bf16.mxu0 %v939_v58  ;;  %972 = vmatprep.subr.bf16.mxu1 %v971_v59  ;;  %v989_v58 = vpack.c.bf16 %v246_v52, %v245_v26  ;;  %v215_v59 = vld [vmem:[#allocation7 + $0x270] sm:$0xff]  ;;  %v991_v61 = vpack.c.bf16 %v264_v55, %v263_v54 }
  0x8c   :  { %v358_v0 = vrot.slane %v339_v56, %v1232_v50  ;;  %v961_v31 = vpack.c.bf16 %v216_v30, %v215_v59 }
  0x8e   :  { %942 = vmatpush3.bf16.msra.mxu0 %v941_v1  ;;  %974 = vmatpush3.bf16.msra.mxu1 %v973_v36  ;;  %v386_v1 = vrot.slane %v343_v29, %v1232_v50  ;;  %v56_v36 = vld [vmem:[#allocation2] sm:$0xff] }
  0x8f   :  { %944 = vmatprep.subr.bf16.mxu0 %v943_v4  ;;  %976 = vmatprep.subr.bf16.mxu1 %v975_v6  ;;  %v699_v2 = vand.u32 2147483647, %v56_v36  ;;  %v698_v24 = vmin.f32 %v56_v36, 0.0 }
  0x90   :  { %v403_v11 = vcombine.low %v358_v0, %v386_v1  ;;  %v404_v15 = vcombine.high %v358_v0, %v386_v1 }
  0x91   :  { %v700_v3 = vsub.f32 0.0, %v699_v2 }
  0x92   :  { %946 = vmatpush3.bf16.msra.mxu0 %v945_v14  ;;  %978 = vmatpush3.bf16.msra.mxu1 %v977_v16 }
  0x93   :  { %948 = vmatprep.subr.bf16.mxu0 %v947_v19  ;;  %980 = vmatprep.subr.bf16.mxu1 %v979_v20  ;;  %v701_v7 = vmul.f32 1.442695, %v700_v3 }
  0x95   :  { %1036 = vpow2.f32 %v701_v7 }
  0x96   :  { %950 = vmatpush3.bf16.msra.mxu0 %v949_v34  ;;  %982 = vmatpush3.bf16.msra.mxu1 %v981_v35 }
  0x97   :  { %952 = vmatprep.subr.bf16.mxu0 %v951_v39  ;;  %984 = vmatprep.subr.bf16.mxu1 %v983_v40 }
  0x9a   :  { %954 = vmatpush3.bf16.msra.mxu0 %v953_v47  ;;  %986 = vmatpush3.bf16.msra.mxu1 %v985_v48 }
  0x9b   :  { %956 = vmatprep.subr.bf16.mxu0 %v955_v25  ;;  %988 = vmatprep.subr.bf16.mxu1 %v987_v51 }
  0x9e   :  { %958 = vmatpush3.bf16.msra.mxu0 %v957_v57  ;;  %990 = vmatpush3.bf16.msra.mxu1 %v989_v58 }
  0x9f   :  { %960 = vmatprep.subr.bf16.mxu0 %v959_v60  ;;  %992 = vmatprep.subr.bf16.mxu1 %v991_v61  ;;  %v1037_v13 = vpop.eup %1036 }
  0xa0   :  { %v703_v14 = vadd.f32 1.0, %v1037_v13 }
  0xa2   :  { %962 = vmatpush3.bf16.msra.mxu0 %v961_v31  ;;  %994 = vmatpush3.bf16.msra.mxu1 %v993_v5  ;;  %1038 = vlog2.f32 %v703_v14 }
  0xa5   :  { %622 = vmatmul.mubr.f32.vlgmr.msra.gmra.mrb[2].mxu0 %v403_v11  ;;  %692 = vmatmul.mubr.f32.vlgmr.msra.gmra.mrb[2].mxu1 %v404_v15 }
  0xac   :  { %v1039_v16 = vpop.eup %1038 }
  0xad   :  { %v705_v28 = vmul.f32 0.6931472, %v1039_v16 }
  0xaf   :  { %v706_v34 = vsub.f32 %v698_v24, %v705_v28 }
 0x158   :  { %v759_v4 = vpop.f32.mrb[0].mxu0  ;;  %v794_v6 = vpop.f32.mrb[0].mxu1 }
 0x159   :  { %v760_v8 = vpop.f32.mrb[1].mxu0  ;;  %v795_v50 = vpop.f32.mrb[1].mxu1 }
 0x15a   :  { %v761_v9 = vadd.f32 %v760_v8, %v759_v4  ;;  %v796_v10 = vadd.f32 %v795_v50, %v794_v6 }
 0x15c   :  { %v554_v12 = vadd.f32 %v796_v10, %v761_v9 }
 0x178   :  { %v829_v17 = vpop.f32.mrb[2].mxu0  ;;  %v864_v18 = vpop.f32.mrb[2].mxu1 }
 0x179   :  { %v830_v19 = vpop.f32.mrb[3].mxu0  ;;  %v865_v20 = vpop.f32.mrb[3].mxu1 }
 0x17a   :  { %v831_v21 = vadd.f32 %v830_v19, %v829_v17  ;;  %v866_v22 = vadd.f32 %v865_v20, %v864_v18 }
 0x17c   :  { %v624_v32 = vadd.f32 %v831_v21, %v554_v12 }
 0x17e   :  { %v694_v33 = vadd.f32 %v866_v22, %v624_v32 }
 0x180   :  { %v697_v35 = vmul.f32 0.125, %v694_v33 }
 0x182   :  { %v707_v37 = vsub.f32 %v697_v35, %v706_v34 }
 0x184   :  { %708 = vst [vmem:[#allocation8] sm:$0xff] %v707_v37 }
 0x185   :  { %713 = vsyncadd [#allocation4], 112  ;;  %s1142_s2 = smov [#allocation8]  }
 0x186   :  { %s714_s27 = sshll.u32 %s1142_s2, 4  ;;  %s715_s27 = int_to_ptr.vmem [resolvable:$true] %s714_s27 }
 0x187   :  { %s1106_s28 = scalar_lea.vmem %s715_s27, 16  ;;  %s1110_s29 = scalar_lea.vmem %s715_s27, 128 }
 0x188   :  { %p1107_p10 = scmp.ne.s32.totalorder %s715_s27, %s1106_s28  ;;  %p1111_p11 = scmp.lt.s32.totalorder %s715_s27, %s715_s27 }
 0x189   :  { %p1112_p12 = scmp.lt.s32.totalorder %s1110_s29, %s1106_s28 }
 0x18b   :  { %p1113_p13 = por %p1112_p12, %p1111_p11 }
 0x18d   :  { %p1114_p0 = pnand %p1113_p13, %p1107_p10 }
 0x18f   :  { %1117 = shalt.err (!%p1114_p0)
}
 0x190   :  { %s1118_s5 = scalar_lea.hbm %s1286_s3, 16 }
 0x191   :  { %p1119_p1 = scmp.ne.s32.totalorder %s1286_s3, %s1118_s5  ;;  %p1122_p2 = scmp.lt.u32.totalorder %s1118_s5, %s1286_s3 }
 0x193   :  { %p1124_p3 = pnand %p1122_p2, %p1119_p1 }
 0x195   :  { %1127 = shalt.err (!%p1124_p3)
}
 0x196   :  { %720 = dma.vmem_to_hbm [thread:$0]  %s715_s27, 16, %s1286_s3, [#allocation4], %s1135_s23, %s1135_s23, %s1136_s24  }
 0x197   :  { %1132 = dma.done.wait [#allocation4], 128  }
 0x198   :  { %1133 = vsyncadd [#allocation4], 4294967168 }
 0x199   :  { %724 = vsyncpa [#allocation3], 1 }
 0x19a   :  { %725 = vsyncpa [#allocation6], 1 }
 0x19b   :  { %726 = vsyncpa [#allocation4], 1 }

</bundles_post_ra>
